<compile_context>
chip_gen: v7x
topology: tpu7x:2x2x1
jax: 0.10.0
libtpu: 0.0.40
codegen_flags: <defaults>
</compile_context>

<pallas_src>
import functools

import jax
import jax.numpy as jnp
from jax.experimental import pallas as pl
from jax.experimental.pallas import tpu as pltpu

LATENT_DIM = 256          # hardcoded in Generator.define_hyperlayer
HYPER_HIDDEN = 256        # layers_hyper = [None, 256, None]
MULTIRES = 6              # ImplicitFunction positional encoding / Generator.dim_in
DIM_IN = 3 * (1 + 2 * MULTIRES)   # 39
LN_EPS = 1e-5
SOFTPLUS_BETA = 100.0
SOFTPLUS_THRESH = 20.0

MAX_TILE_N = 2048                       # per-tile point count (multiple of 128)
HYPER_TCOL = 512                        # hyper-head output-column tile width
VMEM_LIMIT_BYTES = 32 * 1024 * 1024     # explicit scoped-VMEM budget


def _round_up(x, m):
    return (x + m - 1) // m * m


def get_layer_dims(dims):
    return list(zip(dims[:-1], dims[1:]))


def _posenc_perm():
    # New in-kernel posenc column order: [x(3) | sin f0..f5 (18) | cos f0..f5 (18)]
    # Original (PyTorch get_embedder) order: [x, sin f0, cos f0, sin f1, cos f1, ...]
    # perm[j] = original index feeding new column j  (W_new[j] = W_old[perm[j]]).
    perm = list(range(3))
    perm += [3 + 6 * k + d for k in range(MULTIRES) for d in range(3)]
    perm += [6 + 6 * k + d for k in range(MULTIRES) for d in range(3)]
    return jnp.asarray(perm, dtype=jnp.int32)


# --------------------------------------------------------------------------
# Kernel 1: gridded hypernetwork.  Grid over output-column tiles of the
# stacked per-layer heads; the scalar-prefetched layer-id table selects the
# matching first-stage Linear (w1, b1) block so H = relu(latent @ w1 + b1)
# is (cheaply) recomputed per tile while w1 stays VMEM-resident per layer.
# --------------------------------------------------------------------------
def hyper_kernel(layer_id_ref, latent_ref, w1_ref, b1_ref, w2_ref, b2_ref, out_ref):
    del layer_id_ref  # consumed only by the index_maps
    h = jnp.dot(latent_ref[...], w1_ref[0],
                preferred_element_type=jnp.float32) + b1_ref[0]
    h = jnp.maximum(h, 0.0)                # ReLU
    out_ref[...] = (jnp.dot(h, w2_ref[...], preferred_element_type=jnp.float32)
                    + b2_ref[...]).astype(out_ref.dtype)


# --------------------------------------------------------------------------
# Kernel 2: fused ImplicitFunction.forward for one (batch, N-tile) block,
# fully transposed (activations = (width, TILE_N), points on lanes):
#   posenc (one sin + one cos) -> [W^T @ X (+ Wi^T @ posenc) -> LayerNorm over
#   sublanes -> Softplus(beta=100, threshold=20)]* -> final layer.
# Weights arrive already weight-normalized, transposed and posenc-permuted.
# --------------------------------------------------------------------------
def fused_impl_kernel(points_ref, *rest, n_layers):
    out_ref = rest[-1]
    params = rest[:-1]

    x = points_ref[0]                                         # (3, T), lane-dense
    scaled = jnp.concatenate([x * float(2.0 ** k) for k in range(MULTIRES)],
                             axis=0)                          # (18, T)
    inp = jnp.concatenate([x, jnp.sin(scaled), jnp.cos(scaled)], axis=0)  # (39, T)

    feat = inp
    idx = 0
    for li in range(n_layers):
        if li == 0:
            w_ref, b_ref = params[idx], params[idx + 1]
            idx += 2
            y = jnp.dot(w_ref[0], inp, preferred_element_type=jnp.float32) + b_ref[0]
        else:
            wf_ref, wi_ref, b_ref = params[idx], params[idx + 1], params[idx + 2]
            idx += 3
            # interm_coord: W^T @ cat([feat; inp]) == Wf^T @ feat + Wi^T @ inp
            y = (jnp.dot(wf_ref[0], feat, preferred_element_type=jnp.float32)
                 + jnp.dot(wi_ref[0], inp, preferred_element_type=jnp.float32)
                 + b_ref[0])
        if li != n_layers - 1:
            # LayerNorm(k_out, elementwise_affine=False): channels are sublanes.
            mean = jnp.mean(y, axis=0, keepdims=True)
            var = jnp.mean(jnp.square(y - mean), axis=0, keepdims=True)
            y = (y - mean) * jax.lax.rsqrt(var + LN_EPS)
            # Softplus(beta=100) with PyTorch threshold=20 linearization.
            by = SOFTPLUS_BETA * y
            sp = jnp.log1p(jnp.exp(jnp.minimum(by, SOFTPLUS_THRESH))) / SOFTPLUS_BETA
            y = jnp.where(by > SOFTPLUS_THRESH, y, sp)
        feat = y

    out_ref[0] = feat.astype(out_ref.dtype)                   # (k_last, T) lane-dense


# --------------------------------------------------------------------------
# Parameter construction (Generator.get_module_params / define_hyperlayer).
# --------------------------------------------------------------------------
def init_generator_params(key, dims, k0=DIM_IN):
    params = []
    for li, (k_in, k_out) in enumerate(get_layer_dims(dims)):
        if li == 0:
            k_in = k0
        else:
            k_in = k_in + k0          # interm_coord=True
        out_dim = (k_in + 2) * k_out
        key, k1, k2, k3, k4 = jax.random.split(key, 5)
        w1 = jax.random.normal(k1, (LATENT_DIM, HYPER_HIDDEN), jnp.float32) / jnp.sqrt(LATENT_DIM)
        b1 = jax.random.normal(k2, (1, HYPER_HIDDEN), jnp.float32) * 0.01
        w2 = jax.random.normal(k3, (HYPER_HIDDEN, out_dim), jnp.float32) / jnp.sqrt(HYPER_HIDDEN)
        b2 = jax.random.normal(k4, (1, out_dim), jnp.float32) * 0.01
        params.append(dict(w1=w1, b1=b1, w2=w2, b2=b2, k_in=k_in, k_out=k_out))
    return params


def prepare_generator(hyper_params, tcol=HYPER_TCOL):
    """One-time static weight prep (hoisted out of the per-forward path)."""
    w1 = jnp.stack([p["w1"] for p in hyper_params])      # (L, 256, 256)
    b1 = jnp.stack([p["b1"] for p in hyper_params])      # (L, 1, 256)
    w2_cols, b2_cols, layer_ids, metas = [], [], [], []
    off = 0
    for li, p in enumerate(hyper_params):
        k_in, k_out = p["k_in"], p["k_out"]
        od = (k_in + 2) * k_out
        pad = _round_up(od, tcol)                 # column tiles never straddle layers
        w2_cols.append(jnp.pad(p["w2"], ((0, 0), (0, pad - od))))
        b2_cols.append(jnp.pad(p["b2"], ((0, 0), (0, pad - od))))
        layer_ids += [li] * (pad // tcol)
        metas.append(dict(k_in=k_in, k_out=k_out, offset=off, out_dim=od))
        off += pad
    return dict(
        w1=w1, b1=b1,
        w2=jnp.concatenate(w2_cols, axis=1),      # (256, total_cols)
        b2=jnp.concatenate(b2_cols, axis=1),      # (1,   total_cols)
        layer_ids=jnp.asarray(layer_ids, jnp.int32),
        metas=metas, total_cols=off, tcol=tcol,
        perm=_posenc_perm(),
    )


# --------------------------------------------------------------------------
# Generator.forward / hyperlayer_forward.
# --------------------------------------------------------------------------
def generator_forward(latent, prep):
    B = latent.shape[0]
    tcol = prep["tcol"]
    n_col_tiles = int(prep["layer_ids"].shape[0])

    out_all = pl.pallas_call(
        hyper_kernel,
        out_shape=jax.ShapeDtypeStruct((B, prep["total_cols"]), jnp.float32),
        grid_spec=pltpu.PrefetchScalarGridSpec(
            num_scalar_prefetch=1,
            grid=(n_col_tiles,),
            in_specs=[
                pl.BlockSpec((B, LATENT_DIM), lambda j, lid: (0, 0)),
                pl.BlockSpec((1, LATENT_DIM, HYPER_HIDDEN), lambda j, lid: (lid[j], 0, 0)),
                pl.BlockSpec((1, 1, HYPER_HIDDEN), lambda j, lid: (lid[j], 0, 0)),
                pl.BlockSpec((LATENT_DIM, tcol), lambda j, lid: (0, j)),
                pl.BlockSpec((1, tcol), lambda j, lid: (0, j)),
            ],
            out_specs=pl.BlockSpec((B, tcol), lambda j, lid: (0, j)),
        ),
        compiler_params=pltpu.CompilerParams(
            dimension_semantics=("arbitrary",),
            vmem_limit_bytes=VMEM_LIMIT_BYTES),
    )(prep["layer_ids"], latent, prep["w1"], prep["b1"], prep["w2"], prep["b2"])

    # Weight-norm + transpose + posenc-column permutation, once per batch
    # (tiny O(B * #params) work, plain JAX).
    # TODO(synk): could be folded into a tiny follow-up Pallas kernel to shave a
    # few small-op launches for latency-bound calls.
    perm = prep["perm"]
    impl_layers = []
    for li, m in enumerate(prep["metas"]):
        k_in, k_out, off, od = m["k_in"], m["k_out"], m["offset"], m["out_dim"]
        seg = out_all[:, off:off + od].reshape(B, k_in + 2, k_out)
        g, b, v = seg[:, 0:1], seg[:, 1:2], seg[:, 2:]
        w = g * v * jax.lax.rsqrt(jnp.sum(v * v, axis=1, keepdims=True))
        w_t = jnp.swapaxes(w, 1, 2)          # (B, k_out, k_in) — transposed orientation
        b_t = jnp.swapaxes(b, 1, 2)          # (B, k_out, 1)
        if li == 0:
            impl_layers.append((jnp.take(w_t, perm, axis=2), b_t))
        else:
            k_feat = prep["metas"][li - 1]["k_out"]
            wf = w_t[:, :, :k_feat]                              # multiplies feat
            wi = jnp.take(w_t[:, :, k_feat:], perm, axis=2)      # multiplies posenc
            impl_layers.append((wf, wi, b_t))
    return impl_layers


# --------------------------------------------------------------------------
# ImplicitFunction.forward: single fused Pallas kernel, flat grid over
# B * n_tiles point tiles (points / activations / output all lane-dense).
# --------------------------------------------------------------------------
def implicit_function_forward(impl_layers, points):
    B, N, _ = points.shape
    L = len(impl_layers)

    if N <= MAX_TILE_N:
        tile_n = _round_up(N, 128)
        n_pad = tile_n
    else:
        tile_n = MAX_TILE_N
        n_pad = _round_up(N, tile_n)
    pts_t = jnp.swapaxes(points, 1, 2)           # (B, 3, N) — points on lanes
    if n_pad != N:
        pts_t = jnp.pad(pts_t, ((0, 0), (0, 0), (0, n_pad - N)))
    n_tiles = n_pad // tile_n

    def io_map(i):
        return (i // n_tiles, 0, i % n_tiles)

    def param_map(i):
        # Constant over the N tiles of a batch -> params stay resident in VMEM.
        return (i // n_tiles, 0, 0)

    in_arrays = [pts_t]
    in_specs = [pl.BlockSpec((1, 3, tile_n), io_map)]
    for prm in impl_layers:
        for arr in prm:
            in_arrays.append(arr)
            in_specs.append(pl.BlockSpec((1,) + arr.shape[1:], param_map))

    k_last = impl_layers[-1][0].shape[1]
    kernel = functools.partial(fused_impl_kernel, n_layers=L)
    out = pl.pallas_call(
        kernel,
        out_shape=jax.ShapeDtypeStruct((B, k_last, n_pad), jnp.float32),
        grid=(B * n_tiles,),                      # flat parallel axis (megacore-friendly)
        in_specs=in_specs,
        out_specs=pl.BlockSpec((1, k_last, tile_n), io_map),
        compiler_params=pltpu.CompilerParams(
            dimension_semantics=("parallel",),
            vmem_limit_bytes=VMEM_LIMIT_BYTES),
    )(*in_arrays)
    return jnp.swapaxes(out, 1, 2)[:, :N]         # (B, N, k_last)


# --------------------------------------------------------------------------
# Pure-JAX reference for correctness checking (mirrors the PyTorch module,
# original posenc ordering — cross-checks the weight permutation).
# --------------------------------------------------------------------------
def _posenc_ref(x):
    outs = [x]
    for i in range(MULTIRES):
        f = float(2 ** i)
        outs.append(jnp.sin(x * f))
        outs.append(jnp.cos(x * f))
    return jnp.concatenate(outs, axis=-1)


def reference_forward(latent, hyper_params, points):
    B = latent.shape[0]
    gen = []
    for p in hyper_params:
        h = jnp.maximum(latent @ p["w1"] + p["b1"], 0.0)
        out = h @ p["w2"] + p["b2"]
        gen.append(out.reshape(B, p["k_in"] + 2, p["k_out"]))
    inp = _posenc_ref(points)
    feat = inp
    for li, prm in enumerate(gen):
        if li > 0:
            feat = jnp.concatenate([feat, inp], axis=-1)
        g, b, v = prm[:, 0:1], prm[:, 1:2], prm[:, 2:]
        w = g * v / jnp.sqrt(jnp.sum(v * v, axis=1, keepdims=True))
        y = jnp.einsum("bnk,bko->bno", feat, w) + b
        if li != len(gen) - 1:
            mean = y.mean(-1, keepdims=True)
            var = jnp.square(y - mean).mean(-1, keepdims=True)
            y = (y - mean) / jnp.sqrt(var + LN_EPS)
            by = SOFTPLUS_BETA * y
            y = jnp.where(by > SOFTPLUS_THRESH, y,
                          jnp.log1p(jnp.exp(jnp.minimum(by, SOFTPLUS_THRESH))) / SOFTPLUS_BETA)
        feat = y
    return feat


if __name__ == "__main__":
    key = jax.random.PRNGKey(0)
    dims = [3, 32, 32, 4]   # implicit MLP dims (dims[0] is replaced by embed dim = 39)
    B, N = 2, 8

    kp, kl, kx = jax.random.split(key, 3)
    hyper_params = init_generator_params(kp, dims)
    prep = prepare_generator(hyper_params)      # static weight prep, hoisted (once)
    latent = jax.random.normal(kl, (B, LATENT_DIM), jnp.float32)
    points = jax.random.normal(kx, (B, N, 3), jnp.float32)

    # Generator.forward: latent -> hyper-generated, weight-normalized layer params.
    impl_layers = generator_forward(latent, prep)
    # ImplicitFunction.forward: evaluate the generated MLP on the query points.
    out = implicit_function_forward(impl_layers, points)
    out = jax.block_until_ready(out)

    ref = reference_forward(latent, hyper_params, points)
    assert out.shape == (B, N, dims[-1]), out.shape
    assert jnp.allclose(out, ref, rtol=1e-4, atol=1e-4), float(jnp.max(jnp.abs(out - ref)))
    # TODO(synk): Generator.forward returns an nn.Module (ImplicitFunction); here we return
    # the generated layer-parameter tensors plus a callable evaluation instead of a module,
    # and ImplicitFunction.gradient (autograd w.r.t. inputs) is not reimplemented.
    print("KERNEL_OK")
</pallas_src>

<mosaic_0001>
module attributes {stable_mosaic.version = 11 : i64} {
  func.func @hyper_kernel(%arg0: i32, %arg1: memref<9xi32, #tpu.memory_space<smem>>, %arg2: memref<2x256xf32, #tpu.memory_space<vmem>>, %arg3: memref<1x256x256xf32, #tpu.memory_space<vmem>>, %arg4: memref<1x1x256xf32, #tpu.memory_space<vmem>>, %arg5: memref<256x512xf32, #tpu.memory_space<vmem>>, %arg6: memref<1x512xf32, #tpu.memory_space<vmem>>, %arg7: memref<2x512xf32, #tpu.memory_space<vmem>>) attributes {dimension_semantics = [#tpu.dimension_semantics<arbitrary>], iteration_bounds = array<i64: 9>, scalar_prefetch = 1 : i64, scratch_operands = 0 : i64, tpu.core_type = #tpu.core_type<tc>, window_params = [{pipeline_mode = #tpu.pipeline_mode<synchronous>, transform_indices = @transform_0, window_bounds = array<i64: 2, 256>}, {transform_indices = @transform_1, window_bounds = array<i64: 1, 256, 256>}, {transform_indices = @transform_2, window_bounds = array<i64: 1, 1, 256>}, {transform_indices = @transform_3, window_bounds = array<i64: 256, 512>}, {transform_indices = @transform_4, window_bounds = array<i64: 1, 512>}, {transform_indices = @transform_5, window_bounds = array<i64: 2, 512>}]} {
    %c0 = arith.constant 0 : index
    %c0_0 = arith.constant 0 : index
    %0 = vector.load %arg2[%c0, %c0_0] : memref<2x256xf32, #tpu.memory_space<vmem>>, vector<2x256xf32>
    %c0_1 = arith.constant 0 : index
    %c0_2 = arith.constant 0 : index
    %c0_3 = arith.constant 0 : index
    %1 = vector.load %arg3[%c0_1, %c0_2, %c0_3] : memref<1x256x256xf32, #tpu.memory_space<vmem>>, vector<1x256x256xf32>
    %2 = vector.shape_cast %1 : vector<1x256x256xf32> to vector<256x256xf32>
    %cst = arith.constant dense<0.000000e+00> : vector<2x256xf32>
    %3 = tpu.matmul %0, %2, %cst {dimension_numbers = #tpu.dot_dimension_numbers<[1], [0], [0], [1], [0, 0, 1, 1], [], []>} : vector<2x256xf32>, vector<256x256xf32>, vector<2x256xf32> -> vector<2x256xf32>
    %c0_4 = arith.constant 0 : index
    %c0_5 = arith.constant 0 : index
    %c0_6 = arith.constant 0 : index
    %4 = vector.load %arg4[%c0_4, %c0_5, %c0_6] : memref<1x1x256xf32, #tpu.memory_space<vmem>>, vector<1x1x256xf32>
    %5 = vector.shape_cast %4 : vector<1x1x256xf32> to vector<1x256xf32>
    %6 = vector.broadcast %5 : vector<1x256xf32> to vector<2x256xf32>
    %7 = arith.addf %3, %6 : vector<2x256xf32>
    %cst_7 = arith.constant 0.000000e+00 : f32
    %8 = vector.broadcast %cst_7 : f32 to vector<2x256xf32>
    %9 = arith.maximumf %7, %8 : vector<2x256xf32>
    %c0_8 = arith.constant 0 : index
    %c0_9 = arith.constant 0 : index
    %10 = vector.load %arg5[%c0_8, %c0_9] : memref<256x512xf32, #tpu.memory_space<vmem>>, vector<256x512xf32>
    %cst_10 = arith.constant dense<0.000000e+00> : vector<2x512xf32>
    %11 = tpu.matmul %9, %10, %cst_10 {dimension_numbers = #tpu.dot_dimension_numbers<[1], [0], [0], [1], [0, 0, 1, 1], [], []>} : vector<2x256xf32>, vector<256x512xf32>, vector<2x512xf32> -> vector<2x512xf32>
    %c0_11 = arith.constant 0 : index
    %c0_12 = arith.constant 0 : index
    %12 = vector.load %arg6[%c0_11, %c0_12] : memref<1x512xf32, #tpu.memory_space<vmem>>, vector<1x512xf32>
    %13 = vector.broadcast %12 : vector<1x512xf32> to vector<2x512xf32>
    %14 = arith.addf %11, %13 : vector<2x512xf32>
    %c0_13 = arith.constant 0 : index
    %c0_14 = arith.constant 0 : index
    %15 = vector.load %arg7[%c0_13, %c0_14] : memref<2x512xf32, #tpu.memory_space<vmem>>, vector<2x512xf32>
    tpu.vector_store %arg7[%c0_13, %c0_14], %14 {strides = array<i32>} : memref<2x512xf32, #tpu.memory_space<vmem>>, vector<2x512xf32>,
    return
  }
  func.func @transform_0(%arg0: i32, %arg1: memref<9xi32, #tpu.memory_space<smem>>) -> (i32, i32) {
    %c0_i32 = arith.constant 0 : i32
    %c0_i32_0 = arith.constant 0 : i32
    %c0_i32_1 = arith.constant 0 : i32
    return %c0_i32, %c0_i32_0 : i32, i32
  }
  func.func @transform_1(%arg0: i32, %arg1: memref<9xi32, #tpu.memory_space<smem>>) -> (i32, i32, i32) {
    %0 = arith.index_cast %arg0 : i32 to index
    %1 = memref.load %arg1[%0] : memref<9xi32, #tpu.memory_space<smem>>
    %c0_i32 = arith.constant 0 : i32
    %c0_i32_0 = arith.constant 0 : i32
    %c0_i32_1 = arith.constant 0 : i32
    return %1, %c0_i32, %c0_i32_0 : i32, i32, i32
  }
  func.func @transform_2(%arg0: i32, %arg1: memref<9xi32, #tpu.memory_space<smem>>) -> (i32, i32, i32) {
    %0 = arith.index_cast %arg0 : i32 to index
    %1 = memref.load %arg1[%0] : memref<9xi32, #tpu.memory_space<smem>>
    %c0_i32 = arith.constant 0 : i32
    %c0_i32_0 = arith.constant 0 : i32
    %c0_i32_1 = arith.constant 0 : i32
    return %1, %c0_i32, %c0_i32_0 : i32, i32, i32
  }
  func.func @transform_3(%arg0: i32, %arg1: memref<9xi32, #tpu.memory_space<smem>>) -> (i32, i32) {
    %c0_i32 = arith.constant 0 : i32
    %c0_i32_0 = arith.constant 0 : i32
    return %c0_i32, %arg0 : i32, i32
  }
  func.func @transform_4(%arg0: i32, %arg1: memref<9xi32, #tpu.memory_space<smem>>) -> (i32, i32) {
    %c0_i32 = arith.constant 0 : i32
    %c0_i32_0 = arith.constant 0 : i32
    return %c0_i32, %arg0 : i32, i32
  }
  func.func @transform_5(%arg0: i32, %arg1: memref<9xi32, #tpu.memory_space<smem>>) -> (i32, i32) {
    %c0_i32 = arith.constant 0 : i32
    %c0_i32_0 = arith.constant 0 : i32
    return %c0_i32, %arg0 : i32, i32
  }
}

</mosaic_0001>

<bundles_post_ra>
// kernel: tpu_custom_call.1
= control target key start
LH: loop header
LB: loop body
LE: loop exit
PB: predicated region body
PF: predicated region fallthrough
CT: control target
= control target key end

     0   :  { %s2387_s0 = inlined_call_operand.hbm [shape: s32[9], index: 0, kind: input, shape index: {}]   ;;  %s2388_s1 = inlined_call_operand.hbm [shape: f32[2,256], index: 1, kind: input, shape index: {}]   ;;  %s2389_s2 = inlined_call_operand.hbm [shape: f32[3,256,256], index: 2, kind: input, shape index: {}]   ;;  %s2390_s3 = inlined_call_operand.hbm [shape: f32[3,1,256], index: 3, kind: input, shape index: {}]   ;;  %s2391_s4 = inlined_call_operand.hbm [shape: f32[256,4608], index: 4, kind: input, shape index: {}]   ;;  %s2392_s5 = inlined_call_operand.hbm [shape: f32[1,4608], index: 5, kind: input, shape index: {}]   ;;  %s2393_s6 = inlined_call_operand.hbm [shape: f32[2,4608], index: 6, kind: output, shape index: {}]  }
   0x1   :  { %2412 = sst [smem:[#allocation30_spill]] %s2388_s1  ;;  %s1379_s23 = scalar_lea.hbm %s2387_s0, 16 }
   0x2   :  { %2413 = sst [smem:[#allocation31_spill]] %s2389_s2  ;;  %p1380_p0 = scmp.ne.s32.totalorder %s2387_s0, %s1379_s23 }
   0x3   :  { %2414 = sst [smem:[#allocation32_spill]] %s2390_s3  ;;  %p1383_p1 = scmp.lt.u32.totalorder %s1379_s23, %s2387_s0 }
   0x4   :  { %2415 = sst [smem:[#allocation33_spill]] %s2391_s4 }
   0x5   :  { %2416 = sst [smem:[#allocation34_spill]] %s2393_s6  ;;  %p1385_p2 = pnand %p1383_p1, %p1380_p0 }
   0x7   :  { %1388 = shalt.err (!%p1385_p2)  }
   0x8   :  { %s1667_s28 = smov [#allocation3]  }
   0x9   :  { %12 = dma.hbm_to_smem %s2387_s0, 16, %s1667_s28, [#allocation2] }
   0xa   :  { %1605 = dma.done.wait [#allocation2], 16 }
   0xb   :  { %1606 = vsyncadd [#allocation2], 4294967280 }
   0xc   :  { %14 = sfence }
   0xd   :  { %15 = vsyncpa [#allocation5], 0 }
   0xe   :  { %16 = vsyncpa [#allocation8], 0 }
   0xf   :  { %18 = vsyncpa [#allocation8 + $0x1], 0 }
  0x10   :  { %19 = vsyncpa [#allocation11], 0 }
  0x11   :  { %21 = vsyncpa [#allocation11 + $0x1], 0 }
  0x12   :  { %22 = vsyncpa [#allocation6], 0 }
  0x13   :  { %24 = vsyncpa [#allocation6 + $0x1], 0  ;;  %s1727_s7 = smov 0   ;;  %s1729_s8 = smov 0  }
  0x14   :  { %s1731_s9 = smov 0   ;;  %s1733_s10 = smov 0  }
  0x15   :  { %s1735_s11 = smov 0   ;;  %s1737_s0 = smov 0  }
  0x16   :  { %s1739_s12 = smov 0   ;;  %s1741_s13 = smov 0  }
  0x17   :  { %s1743_s14 = smov 0   ;;  %s1745_s15 = smov 0  }
  0x18 LB: > { %2417 = sst [smem:[#allocation24_spill]] %s1649_s0  ;;  %s1778_s16 = sadd.s32 1, %s1665_s15   ;;  %s1665_s15 = sphi %s1745_s15, %s2481_s15   ;;  %s1661_s14 = sphi %s1743_s14, %s2473_s14   ;;  %s1657_s13 = sphi %s1741_s13, %s2480_s13   ;;  %s1653_s12 = sphi %s1739_s12, %s2479_s12   ;;  %s1649_s0 = sphi %s1737_s0, %s2471_s0   ;;  %s1645_s11 = sphi %s1735_s11, %s2478_s11   ;;  %s1641_s10 = sphi %s1733_s10, %s2477_s10   ;;  %s1637_s9 = sphi %s1731_s9, %s2476_s9   ;;  %s1633_s8 = sphi %s1729_s8, %s2475_s8   ;;  %s1629_s7 = sphi %s1727_s7, %s2474_s7  }
  0x19   : > { %2418 = sst [smem:[#allocation25_spill]] %s1661_s14  ;;  %s60_s19 = sadd.s32 1, %s1661_s14 }
  0x1a   : > { %s55_s17 = sld [smem:[#allocation3 + %s1665_s15]]  ;;  %p67_p3 = scmp.ne.s32.totalorder %s1661_s14, %s1657_s13 }
  0x1b   : > { %s56_s18 = sld [smem:[#allocation3 + %s1778_s16]]  ;;  %p2394_p4 = scmp.eq.s32.totalorder %s1665_s15, 0 }
  0x1c   : > { %p2396_p5 = scmp.lt.s32.totalorder %s1665_s15, 9  ;;  %s216_s22 = sand.u32 1, %s1661_s14  }
  0x1d   : > { %p1789_p6 = por %p2394_p4, %p67_p3  ;;  %s1022_s23 = sshll.u32 %s216_s22, 9 }
  0x1e   : > { %s218_s26 = scalar_lea.vmem [#allocation7], %s1022_s23  ;;  %p2395_p10 = scmp.ne.s32.totalorder %s1637_s9, %s1633_s8 }
  0x1f   : > { %p1799_p7 = pnand %p2396_p5, %p1789_p6  ;;  %s226_s27 = sshll.u32 %s218_s26, 4  ;;  %s1815_s27 = int_to_ptr.vmem [resolvable:$true] %s226_s27 }
  0x20   : > { %s1246_s28 = scalar_select %p1789_p6, [#allocation3], [#allocation14] }
  0x21   : > { %s57_s25 = ssub.s32 %s55_s17, %s56_s18  ;;  %s111_s18 = ssub.s32 %s1665_s15, %s1778_s16 }
  0x22   : > { %p58_p8 = scmp.eq.s32.totalorder %s57_s25, 0  ;;  %s2483_s28 = smov (!%p2396_p5, %s1246_s28), [#allocation16] }
  0x23   : > { %s1247_s30 = scalar_select %p1789_p6, %s1665_s15, 0 }
  0x24   : > { %s1806_s29 = scalar_select %p58_p8, %s1661_s14, %s60_s19  }
  0x25   : > { %s2485_s30 = smov (!%p2396_p5, %s1247_s30), 0  ;;  %p1820_p9 = scmp.eq.s32.totalorder %s111_s18, 0 }
  0x26   : > { %2421 = sst [smem:[#allocation26_spill]] %s1806_s29  ;;  %s2423_s2 = sld [smem:[#allocation31_spill]] }
  0x27   : > { %s219_s17 = sld [smem:[%s2483_s28 + %s2485_s30]]  ;;  %p1837_p11 = por %p2395_p10, %p2394_p4 }
  0x28   : > { %s2425_s30 = sand.u32 1, %s1665_s15   ;;  %p1391_p13 = pneg %p1799_p7 }
  0x29   : > { %s2424_s28 = scalar_select %p1837_p11, 1, 0 }
  0x2a   : > { %s1843_s18 = scalar_lea.sflag [#allocation8], %s2425_s30 }
  0x2c   : > { %s1394_s26 = scalar_lea.hbm %s2423_s2, 24576 }
  0x2d   : > { %s1047_s19 = sshll.u32 %s219_s17, 13 }
  0x2e   : > { %s1830_s21 = scalar_lea.hbm %s2423_s2, %s1047_s19 }
  0x2f   : > { %s1389_s17 = scalar_lea.hbm %s1830_s21, 8192  ;;  %p1395_p2 = scmp.lt.u32.totalorder %s1830_s21, %s2423_s2 }
  0x30   : > { %p1390_p12 = scmp.ne.s32.totalorder %s1830_s21, %s1389_s17  ;;  %p1396_p3 = scmp.lt.u32.totalorder %s1394_s26, %s1389_s17 }
  0x31   : > { %p1398_p8 = scmp.lt.u32.totalorder %s1389_s17, %s1830_s21 }
  0x32   : > { %p1392_p0 = pnand %p1391_p13, %p1390_p12  ;;  %p1397_p6 = por %p1396_p3, %p1395_p2 }
  0x34   : > { %p1393_p1 = pneg %p1392_p0  ;;  %p1399_p4 = por %p1398_p8, %p1397_p6 }
  0x36   : > { %p1400_p10 = pnand %p1399_p4, %p1393_p1 }
  0x38   : > { %1403 = shalt.err (!%p1400_p10)
}
  0x39   : > { %s1404_s30 = scalar_lea.vmem %s1815_s27, 8192  ;;  %s1668_s19 = smov [#allocation7]  }
  0x3a   : > { %p1405_p12 = scmp.ne.s32.totalorder %s1815_s27, %s1404_s30  ;;  %s1409_s20 = sshll.u32 %s1668_s19, 4  ;;  %s1410_s20 = int_to_ptr.vmem [resolvable:$false] %s1409_s20 }
  0x3b   : > { %s1411_s22 = scalar_lea.vmem %s1410_s20, 16384  ;;  %p1412_p11 = scmp.lt.s32.totalorder %s1815_s27, %s1410_s20 }
  0x3c   : > { %p1407_p0 = pnand %p1405_p12, %p1391_p13  ;;  %p1413_p2 = scmp.lt.s32.totalorder %s1411_s22, %s1404_s30 }
  0x3e   : > { %p1408_p5 = pneg %p1407_p0  ;;  %p1414_p3 = por %p1413_p2, %p1412_p11 }
  0x40   : > { %p1415_p6 = pnand %p1414_p3, %p1408_p5 }
  0x42   : > { %1418 = shalt.err (!%p1415_p6)
}
  0x43   : > { %s1669_s25 = smov 256   ;;  %s1670_s17 = smov 16  }
  0x44   : > { %1271 = dma.hbm_to_vmem [thread:$0]  (!%p1799_p7), %s1830_s21, 8192, %s1815_s27, %s1843_s18, %s1669_s25, %s1669_s25, %s1670_s17  }
  0x45   : > { %s2426_s26 = sadd.s32 1, %s1637_s9  ;;  %s2428_s19 = sand.u32 1, %s1637_s9  }
  0x46   : > { %s1876_s30 = scalar_select %p1820_p9, %s1637_s9, %s2426_s26  }
  0x47   : > { %s1028_s20 = sshll.u32 %s2428_s19, 10  ;;  %s1049_s22 = sshll.u32 %s1665_s15, 9 }
  0x48   : > { %2427 = sst [smem:[#allocation27_spill]] %s1876_s30  ;;  %s2429_s4 = sld [smem:[#allocation33_spill]] }
  0x49   : > { %s260_s6 = scalar_lea.vmem [#allocation10], %s1028_s20  ;;  %p2430_p4 = scmp.ne.s32.totalorder %s2424_s28, 0 }
  0x4a   : > { %s267_s3 = sshll.u32 %s260_s6, 4  ;;  %p2431_p5 = scmp.lt.s32.totalorder %s1665_s15, 9  ;;  %s1894_s3 = int_to_ptr.vmem [resolvable:$true] %s267_s3 }
  0x4b   : > { %s2433_s24 = sand.u32 1, %s1665_s15  }
  0x4c   : > { %p1890_p7 = pnand %p2431_p5, %p2430_p4  ;;  %s1898_s2 = scalar_lea.sflag [#allocation11], %s2433_s24 }
  0x4e   : > { %s1884_s14 = scalar_lea.hbm %s2429_s4, %s1049_s22  ;;  %p2400_p10 = pneg %p1890_p7 }
  0x4f   : > { %s2432_s21 = scalar_select %p1890_p7, 1, 0 }
  0x50   : > { %s1419_s27 = scalar_lea.hbm %s1884_s14, 16384  ;;  %s1424_s23 = scalar_lea.hbm %s2429_s4, 147456 }
  0x51   : > { %p1420_p9 = scmp.ne.s32.totalorder %s1884_s14, %s1419_s27  ;;  %p1425_p1 = scmp.lt.u32.totalorder %s1884_s14, %s2429_s4 }
  0x52   : > { %p1426_p8 = scmp.lt.u32.totalorder %s1424_s23, %s1419_s27  ;;  %p1428_p0 = scmp.lt.u32.totalorder %s1419_s27, %s1884_s14 }
  0x53   : > { %p1422_p11 = pnand %p2400_p10, %p1420_p9 }
  0x54   : > { %p1427_p12 = por %p1426_p8, %p1425_p1 }
  0x55   : > { %p1423_p13 = pneg %p1422_p11 }
  0x56   : > { %p1429_p2 = por %p1428_p0, %p1427_p12 }
  0x58   : > { %p1430_p3 = pnand %p1429_p2, %p1423_p13 }
  0x5a   : > { %1433 = shalt.err (!%p1430_p3)
}
  0x5b   : > { %s1434_s17 = scalar_lea.vmem %s1894_s3, 16384  ;;  %s1671_s26 = smov [#allocation10]  }
  0x5c   : > { %p1435_p6 = scmp.ne.s32.totalorder %s1894_s3, %s1434_s17  ;;  %s1439_s19 = sshll.u32 %s1671_s26, 4  ;;  %s1440_s19 = int_to_ptr.vmem [resolvable:$false] %s1439_s19 }
  0x5d   : > { %s1441_s20 = scalar_lea.vmem %s1440_s19, 32768  ;;  %p1442_p9 = scmp.lt.s32.totalorder %s1894_s3, %s1440_s19 }
  0x5e   : > { %p1437_p4 = pnand %p1435_p6, %p2400_p10  ;;  %p1443_p11 = scmp.lt.s32.totalorder %s1441_s20, %s1434_s17 }
  0x60   : > { %p1438_p5 = pneg %p1437_p4  ;;  %p1444_p1 = por %p1443_p11, %p1442_p9 }
  0x62   : > { %p1445_p8 = pnand %p1444_p1, %p1438_p5 }
  0x64   : > { %1448 = shalt.err (!%p1445_p8)
}
  0x65   : > { %s1672_s22 = smov 4608   ;;  %s1673_s24 = smov 512  }
  0x66   : > { %s1674_s27 = smov 32   ;;  %s1927_s6 = sadd.s32 4294967295, %s1665_s15  }
  0x67   : > { %1279 = dma.hbm_to_vmem [thread:$0]  (!%p1890_p7), %s1884_s14, 16384, %s1894_s3, %s1898_s2, %s1672_s22, %s1673_s24, %s1674_s27  }
  0x68   : > { %s1018_s29 = sadd.s32 4294967294, %s1665_s15   ;;  %p73_p13 = scmp.ne.s32.totalorder %s1657_s13, %s1653_s12 }
  0x69   : > { %p2402_p12 = scmp.eq.s32.totalorder %s1927_s6, 0  ;;  %p127_p0 = scmp.ne.s32.totalorder %s1633_s8, %s1629_s7 }
  0x6a   : > { %p177_p2 = scmp.eq.s32.totalorder %s1927_s6, 8  ;;  %p183_p3 = scmp.eq.s32.totalorder %s1018_s29, 8 }
  0x6b   : > { %p1938_p6 = por %p2402_p12, %p73_p13  ;;  %p1944_p4 = por %p127_p0, %p2402_p12 }
  0x6c   : > { %p2436_p5 = scmp.ne.s32.totalorder %s1637_s9, %s1633_s8  ;;  %p1955_p11 = por %p183_p3, %p127_p0 }
  0x6d   : > { %s2434_s23 = scalar_select %p1938_p6, 1, 0 }
  0x6e   : > { %s2435_s3 = scalar_select %p1944_p4, 1, 0 }
  0x6f   : > { %p1951_p9 = por %p177_p2, %p2436_p5  ;;  %p1019_p1 = scmp.ge.s32.totalorder %s1665_s15, 1 }
  0x70   : > { %s2438_s14 = scalar_select %p1955_p11, 1, 0 }
  0x71   : > { %s2437_s12 = scalar_select %p1951_p9, 1, 0 }
  0x72   : > { %2439 = sst [smem:[#allocation28_spill]] %s2438_s14  ;;  %p190_p8 = scmp.lt.s32.totalorder %s1665_s15, 10 }
  0x73   : > { %s1675_s25 = smov [#allocation4]   ;;  %s83_s19 = sld [smem:[#allocation3 + %s1665_s15]] }
  0x74   : > { %p1961_p13 = pnand %p1019_p1, %p190_p8  ;;  %s203_s17 = sshll.u32 %s1675_s25, 4  ;;  %s204_s17 = int_to_ptr.vmem [resolvable:$true] %s203_s17 }
  0x75   : > { %s84_s20 = sld [smem:[#allocation3 + %s1778_s16]] }
  0x76   : > { %s2440_s28 = scalar_select %p1961_p13, 1, 0 }
  0x77   : > { %p1262_p10 = pneg %p1961_p13  ;;  %s2442_s1 = sld [smem:[#allocation30_spill]] }
  0x79   : > { %p1969_p2 = pnand %p1262_p10, %p2402_p12 }
  0x7b   : > { %p1451_p3 = pneg %p1969_p2 }
  0x7d   : > { %s1449_s27 = scalar_lea.hbm %s2442_s1, 64 }
  0x7e   : > { %p1450_p0 = scmp.ne.s32.totalorder %s2442_s1, %s1449_s27  ;;  %p1456_p10 = scmp.lt.u32.totalorder %s1449_s27, %s2442_s1 }
  0x80   : > { %p1452_p5 = pnand %p1451_p3, %p1450_p0 }
  0x82   : > { %p1453_p1 = pneg %p1452_p5 }
  0x84   : > { %p1458_p8 = pnand %p1456_p10, %p1453_p1 }
  0x86   : > { %1461 = shalt.err (!%p1458_p8)
}
  0x87   : > { %s1462_s14 = scalar_lea.vmem %s204_s17, 64  ;;  %p1470_p4 = scmp.lt.s32.totalorder %s204_s17, %s204_s17 }
  0x88   : > { %p1463_p12 = scmp.ne.s32.totalorder %s204_s17, %s1462_s14  ;;  %p1471_p6 = scmp.lt.s32.totalorder %s1462_s14, %s1462_s14 }
  0x8a   : > { %p1465_p11 = pnand %p1463_p12, %p1451_p3  ;;  %p1472_p13 = por %p1471_p6, %p1470_p4 }
  0x8c   : > { %p1466_p9 = pneg %p1465_p11 }
  0x8e   : > { %p1473_p7 = pnand %p1472_p13, %p1466_p9 }
  0x90   : > { %1476 = shalt.err (!%p1473_p7)
}
  0x91   : > { %1265 = dma.hbm_to_vmem [thread:$0]  (!%p1969_p2), %s2442_s1, 64, %s204_s17, [#allocation5]  }
  0x92   : > { %p95_p12 = scmp.ne.s32.totalorder %s1649_s0, %s1645_s11  ;;  %p101_p7 = scmp.ne.s32.totalorder %s1645_s11, %s1641_s10 }
  0x93   : > { %s238_s30 = sand.u32 1, %s1649_s0   ;;  %p2443_p6 = scmp.eq.s32.totalorder %s1665_s15, 0 }
  0x94   : > { %s1025_s26 = sshll.u32 %s238_s30, 1  ;;  %p2445_p9 = scmp.eq.s32.totalorder %s1927_s6, 0 }
  0x95   : > { %p1998_p4 = por %p95_p12, %p2443_p6  ;;  %s85_s17 = ssub.s32 %s83_s19, %s84_s20 }
  0x96   : > { %p2004_p11 = por %p101_p7, %p2445_p9  ;;  %s88_s27 = sadd.s32 1, %s1649_s0 }
  0x97   : > { %p86_p13 = scmp.eq.s32.totalorder %s85_s17, 0  ;;  %s240_s10 = scalar_lea.vmem [#allocation9], %s1025_s26 }
  0x98   : > { %s2446_s24 = scalar_select %p2004_p11, 1, 0 }
  0x99   : > { %s2009_s29 = sshll.u32 %s240_s10, 4  ;;  %p2448_p2 = scmp.lt.s32.totalorder %s1665_s15, 9  ;;  %s2062_s29 = int_to_ptr.vmem [resolvable:$true] %s2009_s29 }
  0x9a   : > { %s1249_s25 = scalar_select %p1998_p4, [#allocation3], [#allocation15] }
  0x9b   : > { %s2014_s4 = scalar_select %p86_p13, %s1649_s0, %s88_s27  }
  0x9c   : > { %s1250_s22 = scalar_select %p1998_p4, %s1665_s15, 0 }
  0x9d   : > { %2447 = sst [smem:[#allocation29_spill]] %s2014_s4  ;;  %s2487_s25 = smov (!%p2448_p2, %s1249_s25), [#allocation17] }
  0x9e   : > { %p2449_p0 = pmov %p2448_p2  ;;  %s2452_s20 = sand.u32 1, %s1637_s9  }
  0x9f   : > { %s1031_s30 = sshll.u32 %s2452_s20, 2  ;;  %s1050_s17 = sshll.u32 %s1665_s15, 6 }
  0xa0   : > { %s2489_s22 = smov (!%p2449_p0, %s1250_s22), 0  ;;  %p2450_p3 = pmov %p2449_p0 }
  0xa1   : > { %s2033_s26 = sld [smem:[%s2487_s25 + %s2489_s22]]  ;;  %s2039_s1 = scalar_lea.hbm %s2392_s5, %s1050_s17 }
  0xa2   : > { %p2027_p5 = pnand %p2450_p3, %p1998_p4  ;;  %s281_s14 = scalar_lea.vmem [#allocation12], %s1031_s30 }
  0xa3   : > { %s289_s4 = sshll.u32 %s281_s14, 4  ;;  %s1477_s0 = scalar_lea.hbm %s2039_s1, 64  ;;  %s290_s4 = int_to_ptr.vmem [resolvable:$true] %s289_s4 }
  0xa4   : > { %s2451_s19 = scalar_select %p2027_p5, 1, 0 }
  0xa5   : > { %p1478_p1 = scmp.ne.s32.totalorder %s2039_s1, %s1477_s0  ;;  %p2453_p10 = scmp.ne.s32.totalorder %s2432_s21, 0 }
  0xa6   : > { %s1482_s20 = scalar_lea.hbm %s2392_s5, 576  ;;  %p1483_p6 = scmp.lt.u32.totalorder %s2039_s1, %s2392_s5 }
  0xa7   : > { %p2454_p8 = pneg %p2453_p10  ;;  %p1484_p4 = scmp.lt.u32.totalorder %s1482_s20, %s1477_s0 }
  0xa8   : > { %p1486_p13 = scmp.lt.u32.totalorder %s1477_s0, %s2039_s1 }
  0xa9   : > { %p1480_p12 = pnand %p1478_p1, %p2454_p8  ;;  %p1485_p9 = por %p1484_p4, %p1483_p6 }
  0xab   : > { %p1481_p7 = pneg %p1480_p12  ;;  %p1487_p2 = por %p1486_p13, %p1485_p9 }
  0xad   : > { %p1488_p0 = pnand %p1487_p2, %p1481_p7 }
  0xaf   : > { %1491 = shalt.err (!%p1488_p0)
}
  0xb0   : > { %s1492_s30 = scalar_lea.vmem %s290_s4, 64  ;;  %p2455_p1 = pmov %p2454_p8 }
  0xb1   : > { %p1493_p3 = scmp.ne.s32.totalorder %s290_s4, %s1492_s30  ;;  %s1676_s27 = smov [#allocation12]  }
  0xb2   : > { %s1497_s14 = sshll.u32 %s1676_s27, 4  ;;  %s1498_s14 = int_to_ptr.vmem [resolvable:$false] %s1497_s14 }
  0xb3   : > { %p1495_p8 = pnand %p1493_p3, %p2455_p1  ;;  %s1499_s25 = scalar_lea.vmem %s1498_s14, 128 }
  0xb4   : > { %p1500_p11 = scmp.lt.s32.totalorder %s290_s4, %s1498_s14  ;;  %p1501_p5 = scmp.lt.s32.totalorder %s1499_s25, %s1492_s30 }
  0xb5   : > { %p1496_p12 = pneg %p1495_p8 }
  0xb6   : > { %p1502_p4 = por %p1501_p5, %p1500_p11 }
  0xb8   : > { %p1503_p6 = pnand %p1502_p4, %p1496_p12 }
  0xba   : > { %1506 = shalt.err (!%p1503_p6)
}
  0xbb   : > { %1282 = dma.hbm_to_vmem [thread:$0]  (!%p2453_p10), %s2039_s1, 64, %s290_s4, %s1898_s2  }
  0xbc   : > { %s1048_s0 = sshll.u32 %s2033_s26, 5  ;;  %s2456_s10 = sld [smem:[#allocation32_spill]] }
  0xbd   : > { %p2458_p5 = scmp.ne.s32.totalorder %s2451_s19, 0 }
  0xbf   : > { %p1509_p7 = pneg %p2458_p5 }
  0xc2   : > { %s2457_s17 = smov %s2456_s10  ;;  %s247_s27 = scalar_lea.hbm %s2456_s10, %s1048_s0 }
  0xc3   : > { %s1507_s30 = scalar_lea.hbm %s247_s27, 32  ;;  %s1512_s25 = scalar_lea.hbm %s2457_s17, 96 }
  0xc4   : > { %p1508_p11 = scmp.ne.s32.totalorder %s247_s27, %s1507_s30  ;;  %p1513_p10 = scmp.lt.u32.totalorder %s247_s27, %s2457_s17 }
  0xc5   : > { %p1514_p2 = scmp.lt.u32.totalorder %s1512_s25, %s1507_s30  ;;  %p1516_p3 = scmp.lt.u32.totalorder %s1507_s30, %s247_s27 }
  0xc6   : > { %p1510_p9 = pnand %p1509_p7, %p1508_p11 }
  0xc7   : > { %p1515_p0 = por %p1514_p2, %p1513_p10 }
  0xc8   : > { %p1511_p13 = pneg %p1510_p9 }
  0xc9   : > { %p1517_p1 = por %p1516_p3, %p1515_p0 }
  0xcb   : > { %p1518_p8 = pnand %p1517_p1, %p1511_p13 }
  0xcd   : > { %1521 = shalt.err (!%p1518_p8)
}
  0xce   : > { %s1522_s4 = scalar_lea.vmem %s2062_s29, 32  ;;  %s1677_s26 = smov [#allocation9]  }
  0xcf   : > { %p1523_p12 = scmp.ne.s32.totalorder %s2062_s29, %s1522_s4  ;;  %s1527_s0 = sshll.u32 %s1677_s26, 4  ;;  %s1528_s0 = int_to_ptr.vmem [resolvable:$false] %s1527_s0 }
  0xd0   : > { %s1529_s22 = scalar_lea.vmem %s1528_s0, 64  ;;  %p1530_p11 = scmp.lt.s32.totalorder %s2062_s29, %s1528_s0 }
  0xd1   : > { %p1525_p4 = pnand %p1523_p12, %p1509_p7  ;;  %p1531_p9 = scmp.lt.s32.totalorder %s1529_s22, %s1522_s4 }
  0xd3   : > { %p1526_p6 = pneg %p1525_p4  ;;  %p1532_p10 = por %p1531_p9, %p1530_p11 }
  0xd5   : > { %p1533_p2 = pnand %p1532_p10, %p1526_p6 }
  0xd7   : > { %1536 = shalt.err (!%p1533_p2)
}
  0xd8   : > { %1276 = dma.hbm_to_vmem [thread:$0]  (!%p2458_p5), %s247_s27, 32, %s2062_s29, %s1843_s18  }
  0xd9   : > { %p2459_p13 = scmp.ne.s32.totalorder %s2440_s28, 0 }
  0xda   : > { %p2460_p7 = scmp.eq.s32.totalorder (!%p2459_p13), %s1927_s6, 0 }
  0xdb   : > { %298 = sbr.rel (%p2459_p13) target bundleno = 760 (0x2f8), region = 40 }
  0xe2   : > { %1608 = dma.done.wait (%p2460_p7), [#allocation5], 64   ;;  %p2461_p0 = pmov %p2460_p7 }
  0xe3   : > { %s304_s20 = sand.u32 1, %s1927_s6   ;;  %s306_s10 = sand.u32 1, %s1657_s13  }
  0xe4   : > { %1610 = vsyncadd (%p2461_p0), [#allocation5], 4294967232  ;;  %s1036_s30 = sshll.u32 %s306_s10, 9  ;;  %s305_s21 = scalar_lea.sflag [#allocation8], %s304_s20 }
  0xe5   : > { %s2097_s19 = scalar_lea.vmem [#allocation7], %s1036_s30  ;;  %p2462_p3 = scmp.ne.s32.totalorder %s2434_s23, 0 }
  0xe7   : > { %1612 = dma.done.wait (%p2462_p3), %s305_s21, 8192  }
  0xe8   : > { %1614 = vsyncadd (%p2462_p3), %s305_s21, 4294959104  ;;  %s315_s18 = sand.u32 1, %s1645_s11   ;;  %p2463_p5 = scmp.ne.s32.totalorder %s2446_s24, 0 }
  0xe9   : > { %s2104_s28 = sshll.u32 %s315_s18, 1 }
  0xea   : > { %s317_s29 = scalar_lea.vmem [#allocation9], %s2104_s28 }
  0xeb   : > { %1616 = dma.done.wait (%p2463_p5), %s305_s21, 32  }
  0xec   : > { %1618 = vsyncadd (%p2463_p5), %s305_s21, 4294967264  ;;  %s2112_s27 = sand.u32 1, %s1633_s8   ;;  %s323_s23 = scalar_lea.sflag [#allocation11], %s304_s20 }
  0xed   : > { %s1038_s14 = sshll.u32 %s2112_s27, 10  ;;  %p2464_p1 = scmp.ne.s32.totalorder %s2435_s3, 0 }
  0xee   : > { %s2115_s25 = scalar_lea.vmem [#allocation10], %s1038_s14 }
  0xef   : > { %1620 = dma.done.wait (%p2464_p1), %s323_s23, 16448  }
  0xf0   : > { %1622 = vsyncadd (%p2464_p1), %s323_s23, 4294950848  ;;  %v384_v0 = vld [vmem:[%s2097_s19 + $0x8] sm:$0xff]  ;;  %v386_v1 = vld [vmem:[%s2097_s19 + $0x18] sm:$0xff]  ;;  %s1039_s3 = sshll.u32 %s2112_s27, 2  ;;  %s1040_s1 = sshll.u32 %s2112_s27, 3 }
  0xf1   : > { %v383_v2 = vld [vmem:[%s2097_s19] sm:$0xff]  ;;  %v1052_v3 = vpack.c.bf16 %v386_v1, %v384_v0  ;;  %v385_v4 = vld [vmem:[%s2097_s19 + $0x10] sm:$0xff]  ;;  %v388_v5 = vld [vmem:[%s2097_s19 + $0x28] sm:$0xff]  ;;  %s335_s24 = scalar_lea.vmem [#allocation12], %s1039_s3  ;;  %s1051_s2 = sshll.u32 %s1927_s6, 7 }
  0xf2   : > { %v390_v6 = vld [vmem:[%s2097_s19 + $0x38] sm:$0xff]  ;;  %v1054_v7 = vpack.c.bf16 %v385_v4, %v383_v2  ;;  %v387_v9 = vld [vmem:[%s2097_s19 + $0x20] sm:$0xff]  ;;  %v389_v10 = vld [vmem:[%s2097_s19 + $0x30] sm:$0xff]  ;;  %s376_s4 = scalar_lea.vmem [#allocation13], %s1040_s1  ;;  %s2465_s20 = sld [smem:[#allocation34_spill]] }
  0xf3   : > { %v1056_v8 = vpack.c.bf16 %v390_v6, %v388_v5  ;;  %v392_v11 = vld [vmem:[%s2097_s19 + $0x48] sm:$0xff]  ;;  %1053 = vmatprep.subr.bf16.mxu0 %v1052_v3  ;;  %v394_v12 = vld [vmem:[%s2097_s19 + $0x58] sm:$0xff]  ;;  %v1058_v13 = vpack.c.bf16 %v389_v10, %v387_v9  ;;  %v391_v15 = vld [vmem:[%s2097_s19 + $0x40] sm:$0xff]  ;;  %s873_s26 = sshll.u32 %s376_s4, 4  ;;  %s859_s30 = scalar_lea.sflag [#allocation6], %s2112_s27  ;;  %s2328_s26 = int_to_ptr.vmem [resolvable:$true] %s873_s26 }
  0xf4   : > { %1055 = vmatpush1.bf16.msra.mxu0 %v1054_v7  ;;  %v1060_v14 = vpack.c.bf16 %v394_v12, %v392_v11  ;;  %v393_v16 = vld [vmem:[%s2097_s19 + $0x50] sm:$0xff]  ;;  %v396_v17 = vld [vmem:[%s2097_s19 + $0x68] sm:$0xff]  ;;  %v398_v18 = vld [vmem:[%s2097_s19 + $0x78] sm:$0xff]  ;;  %s1537_s21 = scalar_lea.vmem %s2328_s26, 128  ;;  %p2466_p12 = scmp.ne.s32.totalorder %s2437_s12, 0 }
  0xf5   : > { %1057 = vmatprep.subr.bf16.mxu0 %v1056_v8  ;;  %v1062_v19 = vpack.c.bf16 %v393_v16, %v391_v15  ;;  %v1064_v20 = vpack.c.bf16 %v398_v18, %v396_v17  ;;  %v395_v21 = vld [vmem:[%s2097_s19 + $0x60] sm:$0xff]  ;;  %v397_v22 = vld [vmem:[%s2097_s19 + $0x70] sm:$0xff]  ;;  %v400_v23 = vld [vmem:[%s2097_s19 + $0x88] sm:$0xff]  ;;  %p1538_p8 = scmp.ne.s32.totalorder %s2328_s26, %s1537_s21  ;;  %s1679_s6 = smov [#allocation13]  }
  0xf6   : > { %v402_v24 = vld [vmem:[%s2097_s19 + $0x98] sm:$0xff]  ;;  %v1066_v25 = vpack.c.bf16 %v397_v22, %v395_v21  ;;  %v399_v27 = vld [vmem:[%s2097_s19 + $0x80] sm:$0xff]  ;;  %v401_v28 = vld [vmem:[%s2097_s19 + $0x90] sm:$0xff] }
  0xf7   : > { %v1068_v26 = vpack.c.bf16 %v402_v24, %v400_v23  ;;  %v404_v29 = vld [vmem:[%s2097_s19 + $0xa8] sm:$0xff]  ;;  %v406_v30 = vld [vmem:[%s2097_s19 + $0xb8] sm:$0xff]  ;;  %v1070_v31 = vpack.c.bf16 %v401_v28, %v399_v27  ;;  %v403_v33 = vld [vmem:[%s2097_s19 + $0xa0] sm:$0xff]  ;;  %p1539_p4 = pnand %p1538_p8, %p2466_p12 }
  0xf8   : > { %1059 = vmatpush1.bf16.msra.mxu0 %v1058_v13  ;;  %v1072_v32 = vpack.c.bf16 %v406_v30, %v404_v29  ;;  %v405_v34 = vld [vmem:[%s2097_s19 + $0xb0] sm:$0xff]  ;;  %v408_v35 = vld [vmem:[%s2097_s19 + $0xc8] sm:$0xff]  ;;  %v410_v36 = vld [vmem:[%s2097_s19 + $0xd8] sm:$0xff]  ;;  %s2326_s10 = scalar_lea.hbm %s2465_s20, %s1051_s2 }
  0xf9   : > { %1061 = vmatprep.subr.bf16.mxu0 %v1060_v14  ;;  %v1074_v37 = vpack.c.bf16 %v405_v34, %v403_v33  ;;  %v407_v38 = vld [vmem:[%s2097_s19 + $0xc0] sm:$0xff]  ;;  %v1076_v39 = vpack.c.bf16 %v410_v36, %v408_v35  ;;  %v409_v40 = vld [vmem:[%s2097_s19 + $0xd0] sm:$0xff]  ;;  %v2149_v41 = vld.sshfl [vmem:[#allocation4] sm:$0x33 pattern:$0x76325410]  ;;  %p1540_p6 = pneg %p1539_p4 }
  0xfa   : > { %v544_v42 = vld [vmem:[%s2115_s25 + $0x8] sm:$0xff]  ;;  %v414_v44 = vld [vmem:[%s2097_s19 + $0xf8] sm:$0xff]  ;;  %v467_v45 = vcombine.high %v2149_v41, %v2149_v41  ;;  %v543_v48 = vld [vmem:[%s2115_s25] sm:$0xff]  ;;  %v1078_v50 = vpack.c.bf16 %v409_v40, %v407_v38 }
  0xfb   : > { %v412_v43 = vld [vmem:[%s2097_s19 + $0xe8] sm:$0xff]  ;;  %v411_v55 = vld [vmem:[%s2097_s19 + $0xe0] sm:$0xff]  ;;  %v413_v56 = vld [vmem:[%s2097_s19 + $0xf0] sm:$0xff] }
  0xfc   : > { %1063 = vmatpush1.bf16.msra.mxu0 %v1062_v19  ;;  %v548_v46 = vld [vmem:[%s2115_s25 + $0x28] sm:$0xff]  ;;  %v547_v49 = vld [vmem:[%s2115_s25 + $0x20] sm:$0xff]  ;;  %534 = vmatprep.mubr.f32.mxu0 %v467_v45  ;;  %v1080_v54 = vpack.c.bf16 %v414_v44, %v412_v43  ;;  %v418_v60 = vld [vmem:[%s2097_s19 + $0x118] sm:$0xff]  ;;  %v1082_v1 = vpack.c.bf16 %v413_v56, %v411_v55 }
  0xfd   : > { %1065 = vmatprep.subr.bf16.mxu0 %v1064_v20  ;;  %v1116_v47 = vpack.c.bf16 %v548_v46, %v544_v42  ;;  %v1118_v51 = vpack.c.bf16 %v547_v49, %v543_v48  ;;  %v552_v52 = vld [vmem:[%s2115_s25 + $0x48] sm:$0xff]  ;;  %v551_v58 = vld [vmem:[%s2115_s25 + $0x40] sm:$0xff]  ;;  %v422_v10 = vld [vmem:[%s2097_s19 + $0x138] sm:$0xff] }
  0xfe   : > { %v556_v53 = vld [vmem:[%s2115_s25 + $0x68] sm:$0xff]  ;;  %v555_v61 = vld [vmem:[%s2115_s25 + $0x60] sm:$0xff]  ;;  %v426_v23 = vld [vmem:[%s2097_s19 + $0x158] sm:$0xff] }
  0xff   : > { %1117 = vmatprep.subr.bf16.mxu1 %v1116_v47  ;;  %v1120_v57 = vpack.c.bf16 %v556_v53, %v552_v52  ;;  %v416_v59 = vld [vmem:[%s2097_s19 + $0x108] sm:$0xff]  ;;  %v1122_v62 = vpack.c.bf16 %v555_v61, %v551_v58  ;;  %v415_v6 = vld [vmem:[%s2097_s19 + $0x100] sm:$0xff]  ;;  %v417_v7 = vld [vmem:[%s2097_s19 + $0x110] sm:$0xff] }
 0x100   : > { %1067 = vmatpush1.bf16.msra.mxu0 %v1066_v25  ;;  %1119 = vmatpush1.bf16.msra.mxu1 %v1118_v51  ;;  %v560_v63 = vld [vmem:[%s2115_s25 + $0x88] sm:$0xff]  ;;  %v559_v3 = vld [vmem:[%s2115_s25 + $0x80] sm:$0xff]  ;;  %v1084_v5 = vpack.c.bf16 %v418_v60, %v416_v59  ;;  %v1086_v16 = vpack.c.bf16 %v417_v7, %v415_v6  ;;  %v430_v35 = vld [vmem:[%s2097_s19 + $0x178] sm:$0xff] }
 0x101   : > { %1069 = vmatprep.subr.bf16.mxu0 %v1068_v26  ;;  %1121 = vmatprep.subr.bf16.mxu1 %v1120_v57  ;;  %v564_v0 = vld [vmem:[%s2115_s25 + $0xa8] sm:$0xff]  ;;  %v563_v4 = vld [vmem:[%s2115_s25 + $0xa0] sm:$0xff]  ;;  %v434_v48 = vld [vmem:[%s2097_s19 + $0x198] sm:$0xff] }
 0x102   : > { %v1124_v2 = vpack.c.bf16 %v564_v0, %v560_v63  ;;  %v568_v8 = vld [vmem:[%s2115_s25 + $0xc8] sm:$0xff]  ;;  %v1126_v11 = vpack.c.bf16 %v563_v4, %v559_v3  ;;  %v567_v14 = vld [vmem:[%s2115_s25 + $0xc0] sm:$0xff]  ;;  %v438_v60 = vld [vmem:[%s2097_s19 + $0x1b8] sm:$0xff] }
 0x103   : > { %v420_v9 = vld [vmem:[%s2097_s19 + $0x128] sm:$0xff]  ;;  %v419_v20 = vld [vmem:[%s2097_s19 + $0x120] sm:$0xff]  ;;  %v421_v21 = vld [vmem:[%s2097_s19 + $0x130] sm:$0xff] }
 0x104   : > { %1071 = vmatpush1.bf16.msra.mxu0 %v1070_v31  ;;  %1123 = vmatpush1.bf16.msra.mxu1 %v1122_v62  ;;  %v572_v12 = vld [vmem:[%s2115_s25 + $0xe8] sm:$0xff]  ;;  %v571_v15 = vld [vmem:[%s2115_s25 + $0xe0] sm:$0xff]  ;;  %v1088_v19 = vpack.c.bf16 %v422_v10, %v420_v9  ;;  %v1090_v28 = vpack.c.bf16 %v421_v21, %v419_v20  ;;  %v446_v20 = vld [vmem:[%s2097_s19 + $0x1f8] sm:$0xff] }
 0x105   : > { %1073 = vmatprep.subr.bf16.mxu0 %v1072_v32  ;;  %1125 = vmatprep.subr.bf16.mxu1 %v1124_v2  ;;  %v1128_v13 = vpack.c.bf16 %v572_v12, %v568_v8  ;;  %v576_v17 = vld [vmem:[%s2115_s25 + $0x108] sm:$0xff]  ;;  %v1130_v24 = vpack.c.bf16 %v571_v15, %v567_v14  ;;  %v575_v26 = vld [vmem:[%s2115_s25 + $0x100] sm:$0xff]  ;;  %v442_v8 = vld [vmem:[%s2097_s19 + $0x1d8] sm:$0xff] }
 0x106   : > { %v580_v18 = vld [vmem:[%s2115_s25 + $0x128] sm:$0xff]  ;;  %v579_v27 = vld [vmem:[%s2115_s25 + $0x120] sm:$0xff] }
 0x107   : > { %v424_v22 = vld [vmem:[%s2097_s19 + $0x148] sm:$0xff]  ;;  %v1132_v25 = vpack.c.bf16 %v580_v18, %v576_v17  ;;  %v423_v32 = vld [vmem:[%s2097_s19 + $0x140] sm:$0xff]  ;;  %v425_v33 = vld [vmem:[%s2097_s19 + $0x150] sm:$0xff]  ;;  %v1134_v36 = vpack.c.bf16 %v579_v27, %v575_v26 }
 0x108   : > { %1075 = vmatpush1.bf16.msra.mxu0 %v1074_v37  ;;  %1127 = vmatpush1.bf16.msra.mxu1 %v1126_v11  ;;  %v584_v29 = vld [vmem:[%s2115_s25 + $0x148] sm:$0xff]  ;;  %v1092_v31 = vpack.c.bf16 %v426_v23, %v424_v22  ;;  %v583_v38 = vld [vmem:[%s2115_s25 + $0x140] sm:$0xff]  ;;  %v1094_v40 = vpack.c.bf16 %v425_v33, %v423_v32  ;;  %v550_v32 = vld [vmem:[%s2115_s25 + $0x38] sm:$0xff] }
 0x109   : > { %1077 = vmatprep.subr.bf16.mxu0 %v1076_v39  ;;  %1129 = vmatprep.subr.bf16.mxu1 %v1128_v13  ;;  %v588_v30 = vld [vmem:[%s2115_s25 + $0x168] sm:$0xff]  ;;  %v587_v39 = vld [vmem:[%s2115_s25 + $0x160] sm:$0xff] }
 0x10a   : > { %v428_v34 = vld [vmem:[%s2097_s19 + $0x168] sm:$0xff]  ;;  %v1136_v37 = vpack.c.bf16 %v588_v30, %v584_v29  ;;  %v427_v45 = vld [vmem:[%s2097_s19 + $0x160] sm:$0xff]  ;;  %v429_v46 = vld [vmem:[%s2097_s19 + $0x170] sm:$0xff]  ;;  %v1138_v49 = vpack.c.bf16 %v587_v39, %v583_v38 }
 0x10b   : > { %v592_v42 = vld [vmem:[%s2115_s25 + $0x188] sm:$0xff]  ;;  %v1096_v44 = vpack.c.bf16 %v430_v35, %v428_v34  ;;  %v591_v51 = vld [vmem:[%s2115_s25 + $0x180] sm:$0xff]  ;;  %v1098_v53 = vpack.c.bf16 %v429_v46, %v427_v45  ;;  %v558_v45 = vld [vmem:[%s2115_s25 + $0x78] sm:$0xff] }
 0x10c   : > { %1079 = vmatpush1.bf16.msra.mxu0 %v1078_v50  ;;  %1131 = vmatpush1.bf16.msra.mxu1 %v1130_v24  ;;  %v596_v43 = vld [vmem:[%s2115_s25 + $0x1a8] sm:$0xff]  ;;  %v595_v52 = vld [vmem:[%s2115_s25 + $0x1a0] sm:$0xff] }
 0x10d   : > { %1081 = vmatprep.subr.bf16.mxu0 %v1080_v54  ;;  %1133 = vmatprep.subr.bf16.mxu1 %v1132_v25  ;;  %v432_v47 = vld [vmem:[%s2097_s19 + $0x188] sm:$0xff]  ;;  %v1140_v50 = vpack.c.bf16 %v596_v43, %v592_v42  ;;  %v431_v57 = vld [vmem:[%s2097_s19 + $0x180] sm:$0xff]  ;;  %v433_v58 = vld [vmem:[%s2097_s19 + $0x190] sm:$0xff]  ;;  %v1142_v61 = vpack.c.bf16 %v595_v52, %v591_v51 }
 0x10e   : > { %v600_v54 = vld [vmem:[%s2115_s25 + $0x1c8] sm:$0xff]  ;;  %v1100_v56 = vpack.c.bf16 %v434_v48, %v432_v47  ;;  %v599_v63 = vld [vmem:[%s2115_s25 + $0x1c0] sm:$0xff]  ;;  %v545_v42 = vld [vmem:[%s2115_s25 + $0x10] sm:$0xff] }
 0x10f   : > { %v604_v55 = vld [vmem:[%s2115_s25 + $0x1e8] sm:$0xff]  ;;  %v603_v0 = vld [vmem:[%s2115_s25 + $0x1e0] sm:$0xff]  ;;  %v549_v43 = vld [vmem:[%s2115_s25 + $0x30] sm:$0xff] }
 0x110   : > { %1083 = vmatpush1.bf16.msra.mxu0 %v1082_v1  ;;  %1135 = vmatpush1.bf16.msra.mxu1 %v1134_v36  ;;  %v436_v59 = vld [vmem:[%s2097_s19 + $0x1a8] sm:$0xff]  ;;  %v1144_v62 = vpack.c.bf16 %v604_v55, %v600_v54  ;;  %v1102_v1 = vpack.c.bf16 %v433_v58, %v431_v57  ;;  %v437_v6 = vld [vmem:[%s2097_s19 + $0x1b0] sm:$0xff]  ;;  %v1146_v9 = vpack.c.bf16 %v603_v0, %v599_v63  ;;  %v439_v17 = vld [vmem:[%s2097_s19 + $0x1c0] sm:$0xff] }
 0x111   : > { %1085 = vmatprep.subr.bf16.mxu0 %v1084_v5  ;;  %1137 = vmatprep.subr.bf16.mxu1 %v1136_v37  ;;  %v608_v2 = vld [vmem:[%s2115_s25 + $0x208] sm:$0xff]  ;;  %v1104_v4 = vpack.c.bf16 %v438_v60, %v436_v59  ;;  %v435_v5 = vld [vmem:[%s2097_s19 + $0x1a0] sm:$0xff]  ;;  %v553_v54 = vld [vmem:[%s2115_s25 + $0x50] sm:$0xff] }
 0x112   : > { %v612_v3 = vld [vmem:[%s2115_s25 + $0x228] sm:$0xff]  ;;  %v607_v11 = vld [vmem:[%s2115_s25 + $0x200] sm:$0xff]  ;;  %v1106_v13 = vpack.c.bf16 %v437_v6, %v435_v5  ;;  %v557_v55 = vld [vmem:[%s2115_s25 + $0x70] sm:$0xff] }
 0x113   : > { %v440_v7 = vld [vmem:[%s2097_s19 + $0x1c8] sm:$0xff]  ;;  %v1148_v10 = vpack.c.bf16 %v612_v3, %v608_v2  ;;  %v441_v18 = vld [vmem:[%s2097_s19 + $0x1d0] sm:$0xff]  ;;  %v443_v29 = vld [vmem:[%s2097_s19 + $0x1e0] sm:$0xff] }
 0x114   : > { %1087 = vmatpush1.bf16.msra.mxu0 %v1086_v16  ;;  %1139 = vmatpush1.bf16.msra.mxu1 %v1138_v49  ;;  %v611_v12 = vld [vmem:[%s2115_s25 + $0x220] sm:$0xff]  ;;  %v616_v14 = vld [vmem:[%s2115_s25 + $0x248] sm:$0xff]  ;;  %v1108_v16 = vpack.c.bf16 %v442_v8, %v440_v7  ;;  %v1110_v25 = vpack.c.bf16 %v441_v18, %v439_v17  ;;  %v566_v57 = vld [vmem:[%s2115_s25 + $0xb8] sm:$0xff] }
 0x115   : > { %1089 = vmatprep.subr.bf16.mxu0 %v1088_v19  ;;  %1141 = vmatprep.subr.bf16.mxu1 %v1140_v50  ;;  %v620_v15 = vld [vmem:[%s2115_s25 + $0x268] sm:$0xff]  ;;  %v1150_v21 = vpack.c.bf16 %v611_v12, %v607_v11  ;;  %v615_v23 = vld [vmem:[%s2115_s25 + $0x240] sm:$0xff]  ;;  %v1182_v50 = vpack.c.bf16 %v549_v43, %v545_v42  ;;  %v561_v2 = vld [vmem:[%s2115_s25 + $0x90] sm:$0xff] }
 0x116   : > { %v444_v19 = vld [vmem:[%s2097_s19 + $0x1e8] sm:$0xff]  ;;  %v1152_v22 = vpack.c.bf16 %v620_v15, %v616_v14  ;;  %v445_v30 = vld [vmem:[%s2097_s19 + $0x1f0] sm:$0xff]  ;;  %v578_v15 = vld [vmem:[%s2115_s25 + $0x118] sm:$0xff]  ;;  %s1541_s19 = sshll.u32 %s1679_s6, 4  ;;  %s1542_s19 = int_to_ptr.vmem [resolvable:$false] %s1541_s19 }
 0x117   : > { %v619_v24 = vld [vmem:[%s2115_s25 + $0x260] sm:$0xff]  ;;  %v624_v26 = vld [vmem:[%s2115_s25 + $0x288] sm:$0xff]  ;;  %v1114_v37 = vpack.c.bf16 %v445_v30, %v443_v29  ;;  %v565_v3 = vld [vmem:[%s2115_s25 + $0xb0] sm:$0xff]  ;;  %s1543_s18 = scalar_lea.vmem %s1542_s19, 256  ;;  %p1544_p11 = scmp.lt.s32.totalorder %s2328_s26, %s1542_s19 }
 0x118   : > { %1091 = vmatpush1.bf16.msra.mxu0 %v1090_v28  ;;  %1143 = vmatpush1.bf16.msra.mxu1 %v1142_v61  ;;  %v628_v27 = vld [vmem:[%s2115_s25 + $0x2a8] sm:$0xff]  ;;  %v1112_v28 = vpack.c.bf16 %v446_v20, %v444_v19  ;;  %v1154_v33 = vpack.c.bf16 %v619_v24, %v615_v23  ;;  %v623_v35 = vld [vmem:[%s2115_s25 + $0x280] sm:$0xff]  ;;  %v573_v14 = vld [vmem:[%s2115_s25 + $0xf0] sm:$0xff]  ;;  %p1545_p9 = scmp.lt.s32.totalorder %s1543_s18, %s1537_s21 }
 0x119   : > { %1093 = vmatprep.subr.bf16.mxu0 %v1092_v31  ;;  %1145 = vmatprep.subr.bf16.mxu1 %v1144_v62  ;;  %v546_v31 = vld [vmem:[%s2115_s25 + $0x18] sm:$0xff]  ;;  %v1156_v34 = vpack.c.bf16 %v628_v27, %v624_v26  ;;  %v627_v36 = vld [vmem:[%s2115_s25 + $0x2a0] sm:$0xff]  ;;  %v632_v38 = vld [vmem:[%s2115_s25 + $0x2c8] sm:$0xff]  ;;  %v1186_v62 = vpack.c.bf16 %v557_v55, %v553_v54 }
 0x11a   : > { %v636_v39 = vld [vmem:[%s2115_s25 + $0x2e8] sm:$0xff]  ;;  %v1158_v46 = vpack.c.bf16 %v627_v36, %v623_v35  ;;  %v631_v48 = vld [vmem:[%s2115_s25 + $0x2c0] sm:$0xff]  ;;  %v586_v23 = vld [vmem:[%s2115_s25 + $0x158] sm:$0xff]  ;;  %p1546_p10 = por %p1545_p9, %p1544_p11 }
 0x11b   : > { %v1160_v47 = vpack.c.bf16 %v636_v39, %v632_v38  ;;  %v635_v49 = vld [vmem:[%s2115_s25 + $0x2e0] sm:$0xff]  ;;  %v640_v51 = vld [vmem:[%s2115_s25 + $0x308] sm:$0xff]  ;;  %v590_v24 = vld [vmem:[%s2115_s25 + $0x178] sm:$0xff] }
 0x11c   : > { %1095 = vmatpush1.bf16.msra.mxu0 %v1094_v40  ;;  %1147 = vmatpush1.bf16.msra.mxu1 %v1146_v9  ;;  %v1180_v40 = vpack.c.bf16 %v550_v32, %v546_v31  ;;  %v644_v52 = vld [vmem:[%s2115_s25 + $0x328] sm:$0xff]  ;;  %v1162_v58 = vpack.c.bf16 %v635_v49, %v631_v48  ;;  %v639_v60 = vld [vmem:[%s2115_s25 + $0x300] sm:$0xff]  ;;  %v1190_v9 = vpack.c.bf16 %v565_v3, %v561_v2  ;;  %v585_v27 = vld [vmem:[%s2115_s25 + $0x150] sm:$0xff]  ;;  %p1547_p2 = pnand %p1546_p10, %p1540_p6 }
 0x11d   : > { %1097 = vmatprep.subr.bf16.mxu0 %v1096_v44  ;;  %1149 = vmatprep.subr.bf16.mxu1 %v1148_v10  ;;  %v554_v44 = vld [vmem:[%s2115_s25 + $0x58] sm:$0xff]  ;;  %v1164_v59 = vpack.c.bf16 %v644_v52, %v640_v51  ;;  %v643_v61 = vld [vmem:[%s2115_s25 + $0x320] sm:$0xff]  ;;  %v648_v63 = vld [vmem:[%s2115_s25 + $0x348] sm:$0xff]  ;;  %v1200_v26 = vpack.c.bf16 %v590_v24, %v586_v23 }
 0x11e   : > { %v652_v0 = vld [vmem:[%s2115_s25 + $0x368] sm:$0xff]  ;;  %v1166_v5 = vpack.c.bf16 %v643_v61, %v639_v60  ;;  %v647_v7 = vld [vmem:[%s2115_s25 + $0x340] sm:$0xff]  ;;  %v594_v29 = vld [vmem:[%s2115_s25 + $0x198] sm:$0xff] }
 0x11f   : > { %v1168_v6 = vpack.c.bf16 %v652_v0, %v648_v63  ;;  %v651_v8 = vld [vmem:[%s2115_s25 + $0x360] sm:$0xff]  ;;  %v656_v10 = vld [vmem:[%s2115_s25 + $0x388] sm:$0xff]  ;;  %v598_v30 = vld [vmem:[%s2115_s25 + $0x1b8] sm:$0xff] }
 0x120   : > { %1099 = vmatpush1.bf16.msra.mxu0 %v1098_v53  ;;  %1151 = vmatpush1.bf16.msra.mxu1 %v1150_v21  ;;  %v1184_v53 = vpack.c.bf16 %v558_v45, %v554_v44  ;;  %v660_v11 = vld [vmem:[%s2115_s25 + $0x3a8] sm:$0xff]  ;;  %v1170_v17 = vpack.c.bf16 %v651_v8, %v647_v7  ;;  %v577_v21 = vld [vmem:[%s2115_s25 + $0x110] sm:$0xff]  ;;  %v1204_v32 = vpack.c.bf16 %v598_v30, %v594_v29  ;;  %v602_v35 = vld [vmem:[%s2115_s25 + $0x1d8] sm:$0xff] }
 0x121   : > { %1101 = vmatprep.subr.bf16.mxu0 %v1100_v56  ;;  %1153 = vmatprep.subr.bf16.mxu1 %v1152_v22  ;;  %v562_v56 = vld [vmem:[%s2115_s25 + $0x98] sm:$0xff]  ;;  %v1172_v18 = vpack.c.bf16 %v660_v11, %v656_v10  ;;  %v581_v22 = vld [vmem:[%s2115_s25 + $0x130] sm:$0xff]  ;;  %v664_v23 = vld [vmem:[%s2115_s25 + $0x3c8] sm:$0xff] }
 0x122   : > { %v606_v36 = vld [vmem:[%s2115_s25 + $0x1f8] sm:$0xff]  ;;  %v601_v39 = vld [vmem:[%s2115_s25 + $0x1d0] sm:$0xff]  ;;  %v668_v24 = vld [vmem:[%s2115_s25 + $0x3e8] sm:$0xff] }
 0x123   : > { %v1208_v38 = vpack.c.bf16 %v606_v36, %v602_v35  ;;  %v610_v42 = vld [vmem:[%s2115_s25 + $0x218] sm:$0xff]  ;;  %v617_v52 = vld [vmem:[%s2115_s25 + $0x250] sm:$0xff]  ;;  %v667_v29 = vld [vmem:[%s2115_s25 + $0x3e0] sm:$0xff]  ;;  %v449_v35 = vlaneseq }
 0x124   : > { %1103 = vmatpush1.bf16.msra.mxu0 %v1102_v1  ;;  %1155 = vmatpush1.bf16.msra.mxu1 %v1154_v33  ;;  %v1188_v1 = vpack.c.bf16 %v566_v57, %v562_v56  ;;  %v593_v33 = vld [vmem:[%s2115_s25 + $0x190] sm:$0xff]  ;;  %v614_v43 = vld [vmem:[%s2115_s25 + $0x238] sm:$0xff] }
 0x125   : > { %1105 = vmatprep.subr.bf16.mxu0 %v1104_v4  ;;  %1157 = vmatprep.subr.bf16.mxu1 %v1156_v34  ;;  %v570_v4 = vld [vmem:[%s2115_s25 + $0xd8] sm:$0xff]  ;;  %v597_v34 = vld [vmem:[%s2115_s25 + $0x1b0] sm:$0xff]  ;;  %v1212_v45 = vpack.c.bf16 %v614_v43, %v610_v42  ;;  %v450_v36 = vshrl.u32 %v449_v35, 7 }
 0x126   : > { %v618_v48 = vld [vmem:[%s2115_s25 + $0x258] sm:$0xff]  ;;  %v633_v0 = vld [vmem:[%s2115_s25 + $0x2d0] sm:$0xff] }
 0x127   : > { %v622_v49 = vld [vmem:[%s2115_s25 + $0x278] sm:$0xff]  ;;  %v649_v11 = vld [vmem:[%s2115_s25 + $0x350] sm:$0xff] }
 0x128   : > { %1107 = vmatpush1.bf16.msra.mxu0 %v1106_v13  ;;  %1159 = vmatpush1.bf16.msra.mxu1 %v1158_v46  ;;  %v569_v13 = vld [vmem:[%s2115_s25 + $0xd0] sm:$0xff]  ;;  %v1216_v51 = vpack.c.bf16 %v622_v49, %v618_v48  ;;  %v626_v54 = vld [vmem:[%s2115_s25 + $0x298] sm:$0xff]  ;;  %v683_v49 = vsub.s32 2, %v450_v36 }
 0x129   : > { %1109 = vmatprep.subr.bf16.mxu0 %v1108_v16  ;;  %1161 = vmatprep.subr.bf16.mxu1 %v1160_v47  ;;  %v582_v16 = vld [vmem:[%s2115_s25 + $0x138] sm:$0xff]  ;;  %v1194_v19 = vpack.c.bf16 %v573_v14, %v569_v13  ;;  %v609_v46 = vld [vmem:[%s2115_s25 + $0x210] sm:$0xff] }
 0x12a   : > { %v1196_v20 = vpack.c.bf16 %v582_v16, %v578_v15  ;;  %v613_v47 = vld [vmem:[%s2115_s25 + $0x230] sm:$0xff]  ;;  %v630_v55 = vld [vmem:[%s2115_s25 + $0x2b8] sm:$0xff] }
 0x12b   : > { %v1220_v57 = vpack.c.bf16 %v630_v55, %v626_v54  ;;  %v634_v60 = vld [vmem:[%s2115_s25 + $0x2d8] sm:$0xff] }
 0x12c   : > { %1111 = vmatpush1.bf16.msra.mxu0 %v1110_v25  ;;  %1163 = vmatpush1.bf16.msra.mxu1 %v1162_v58  ;;  %v1198_v25 = vpack.c.bf16 %v581_v22, %v577_v21  ;;  %v625_v58 = vld [vmem:[%s2115_s25 + $0x290] sm:$0xff]  ;;  %v638_v61 = vld [vmem:[%s2115_s25 + $0x2f8] sm:$0xff] }
 0x12d   : > { %1113 = vmatprep.subr.bf16.mxu0 %v1112_v28  ;;  %1165 = vmatprep.subr.bf16.mxu1 %v1164_v59  ;;  %v589_v28 = vld [vmem:[%s2115_s25 + $0x170] sm:$0xff]  ;;  %v1224_v63 = vpack.c.bf16 %v638_v61, %v634_v60  ;;  %v642_v2 = vld [vmem:[%s2115_s25 + $0x318] sm:$0xff] }
 0x12e   : > { %v1202_v31 = vpack.c.bf16 %v589_v28, %v585_v27  ;;  %v629_v59 = vld [vmem:[%s2115_s25 + $0x2b0] sm:$0xff]  ;;  %v646_v3 = vld [vmem:[%s2115_s25 + $0x338] sm:$0xff]  ;;  %v663_v28 = vld [vmem:[%s2115_s25 + $0x3c0] sm:$0xff] }
 0x12f   : > { %v650_v7 = vld [vmem:[%s2115_s25 + $0x358] sm:$0xff]  ;;  %v661_v21 = vld [vmem:[%s2115_s25 + $0x3b0] sm:$0xff] }
 0x130   : > { %1115 = vmatpush1.bf16.msra.mxu0 %v1114_v37  ;;  %1167 = vmatpush1.bf16.msra.mxu1 %v1166_v5  ;;  %v1206_v37 = vpack.c.bf16 %v597_v34, %v593_v33  ;;  %v641_v5 = vld [vmem:[%s2115_s25 + $0x310] sm:$0xff]  ;;  %v654_v8 = vld [vmem:[%s2115_s25 + $0x378] sm:$0xff] }
 0x131   : > { %1181 = vmatprep.subr.bf16.mxu0 %v1180_v40  ;;  %1169 = vmatprep.subr.bf16.mxu1 %v1168_v6  ;;  %v605_v40 = vld [vmem:[%s2115_s25 + $0x1f0] sm:$0xff]  ;;  %v1232_v10 = vpack.c.bf16 %v654_v8, %v650_v7  ;;  %v658_v13 = vld [vmem:[%s2115_s25 + $0x398] sm:$0xff] }
 0x132   : > { %v1210_v44 = vpack.c.bf16 %v605_v40, %v601_v39  ;;  %v645_v6 = vld [vmem:[%s2115_s25 + $0x330] sm:$0xff]  ;;  %v662_v14 = vld [vmem:[%s2115_s25 + $0x3b8] sm:$0xff]  ;;  %v455_v39 = vsub.s32 1, %v450_v36 }
 0x133   : > { %535 = vmatmul.mubr.f32.vlgmr.msra.gmra.mrb[0].mxu0 %v2149_v41  ;;  %v574_v41 = vld [vmem:[%s2115_s25 + $0xf8] sm:$0xff]  ;;  %v1236_v16 = vpack.c.bf16 %v662_v14, %v658_v13  ;;  %v669_v33 = vld [vmem:[%s2115_s25 + $0x3f0] sm:$0xff] }
 0x134   : > { %1183 = vmatpush1.bf16.msra.mxu0 %v1182_v50  ;;  %v1192_v12 = vpack.c.bf16 %v574_v41, %v570_v4  ;;  %1171 = vmatpush1.bf16.msra.mxu1 %v1170_v17  ;;  %v1214_v50 = vpack.c.bf16 %v613_v47, %v609_v46  ;;  %v1228_v41 = vpack.c.bf16 %v646_v3, %v642_v2  ;;  %v655_v17 = vld [vmem:[%s2115_s25 + $0x380] sm:$0xff]  ;;  %v670_v27 = vld [vmem:[%s2115_s25 + $0x3f8] sm:$0xff] }
 0x135   : > { %1185 = vmatprep.subr.bf16.mxu0 %v1184_v53  ;;  %1173 = vmatprep.subr.bf16.mxu1 %v1172_v18  ;;  %v621_v53 = vld [vmem:[%s2115_s25 + $0x270] sm:$0xff]  ;;  %v659_v18 = vld [vmem:[%s2115_s25 + $0x3a0] sm:$0xff] }
 0x136   : > { %v1218_v56 = vpack.c.bf16 %v621_v53, %v617_v52  ;;  %v687_v53 = vsub.s32 3, %v450_v36 }
 0x138   : > { %1187 = vmatpush1.bf16.msra.mxu0 %v1186_v62  ;;  %v1222_v62 = vpack.c.bf16 %v629_v59, %v625_v58 }
 0x139   : > { %1189 = vmatprep.subr.bf16.mxu0 %v1188_v1  ;;  %v637_v1 = vld [vmem:[%s2115_s25 + $0x2f0] sm:$0xff] }
 0x13a   : > { %v1226_v4 = vpack.c.bf16 %v637_v1, %v633_v0 }
 0x13c   : > { %1191 = vmatpush1.bf16.msra.mxu0 %v1190_v9  ;;  %v1230_v9 = vpack.c.bf16 %v645_v6, %v641_v5 }
 0x13d   : > { %1193 = vmatprep.subr.bf16.mxu0 %v1192_v12  ;;  %v653_v12 = vld [vmem:[%s2115_s25 + $0x370] sm:$0xff] }
 0x13e   : > { %v1234_v15 = vpack.c.bf16 %v653_v12, %v649_v11 }
 0x140   : > { %1195 = vmatpush1.bf16.msra.mxu0 %v1194_v19  ;;  %v657_v19 = vld [vmem:[%s2115_s25 + $0x390] sm:$0xff] }
 0x141   : > { %1197 = vmatprep.subr.bf16.mxu0 %v1196_v20  ;;  %v1174_v20 = vpack.c.bf16 %v659_v18, %v655_v17  ;;  %v1238_v22 = vpack.c.bf16 %v661_v21, %v657_v19 }
 0x143   : > { %1175 = vmatpush1.bf16.msra.mxu1 %v1174_v20 }
 0x144   : > { %1199 = vmatpush1.bf16.msra.mxu0 %v1198_v25  ;;  %v666_v25 = vld [vmem:[%s2115_s25 + $0x3d8] sm:$0xff] }
 0x145   : > { %1201 = vmatprep.subr.bf16.mxu0 %v1200_v26  ;;  %v1176_v26 = vpack.c.bf16 %v668_v24, %v664_v23  ;;  %v1240_v30 = vpack.c.bf16 %v670_v27, %v666_v25 }
 0x147   : > { %1177 = vmatprep.subr.bf16.mxu1 %v1176_v26 }
 0x148   : > { %1203 = vmatpush1.bf16.msra.mxu0 %v1202_v31  ;;  %v1178_v31 = vpack.c.bf16 %v667_v29, %v663_v28 }
 0x149   : > { %1205 = vmatprep.subr.bf16.mxu0 %v1204_v32  ;;  %v665_v32 = vld [vmem:[%s2115_s25 + $0x3d0] sm:$0xff] }
 0x14a   : > { %v1242_v34 = vpack.c.bf16 %v669_v33, %v665_v32  ;;  %1179 = vmatpush1.bf16.msra.mxu1 %v1178_v31 }
 0x14c   : > { %1207 = vmatpush1.bf16.msra.mxu0 %v1206_v37  ;;  %v451_v37 = vsub.s32 0, %v450_v36 }
 0x14d   : > { %1209 = vmatprep.subr.bf16.mxu0 %v1208_v38  ;;  %v447_v38 = vld [vmem:[%s317_s29] sm:$0x3] }
 0x14e   : > { %v452_v40 = vrot.slane %v447_v38, %v451_v37  ;;  %v456_v42 = vrot.slane %v447_v38, %v455_v39 }
 0x150   : > { %1211 = vmatpush1.bf16.msra.mxu0 %v1210_v44 }
 0x151   : > { %1213 = vmatprep.subr.bf16.mxu0 %v1212_v45 }
 0x154   : > { %1215 = vmatpush1.bf16.msra.mxu0 %v1214_v50  ;;  %v671_v50 = vld [vmem:[%s335_s24] sm:$0xf] }
 0x155   : > { %1217 = vmatprep.subr.bf16.mxu0 %v1216_v51  ;;  %v1678_v51 = vmov 1983009808   ;;  %v676_v54 = vrot.slane %v671_v50, %v451_v37  ;;  %v684_v55 = vrot.slane %v671_v50, %v683_v49  ;;  %v688_v58 = vrot.slane %v671_v50, %v687_v53 }
 0x156   : > { %v842_v52 = vunpack.c.l.s4 %v1678_v51 }
 0x158   : > { %1219 = vmatpush1.bf16.msra.mxu0 %v1218_v56  ;;  %v680_v56 = vrot.slane %v671_v50, %v455_v39 }
 0x159   : > { %1221 = vmatprep.subr.bf16.mxu0 %v1220_v57  ;;  %v843_v57 = vunpack.c.0.s8 %v842_v52 }
 0x15b   : > { %v846_v2 = vsub.s32 %v843_v57, %v450_v36 }
 0x15c   : > { %1223 = vmatpush1.bf16.msra.mxu0 %v1222_v62 }
 0x15d   : > { %1225 = vmatprep.subr.bf16.mxu0 %v1224_v63 }
 0x160   : > { %1227 = vmatpush1.bf16.msra.mxu0 %v1226_v4 }
 0x161   : > { %1229 = vmatprep.subr.bf16.mxu0 %v1228_v41 }
 0x164   : > { %1231 = vmatpush1.bf16.msra.mxu0 %v1230_v9 }
 0x165   : > { %1233 = vmatprep.subr.bf16.mxu0 %v1232_v10 }
 0x168   : > { %1235 = vmatpush1.bf16.msra.mxu0 %v1234_v15 }
 0x169   : > { %1237 = vmatprep.subr.bf16.mxu0 %v1236_v16 }
 0x16c   : > { %1239 = vmatpush1.bf16.msra.mxu0 %v1238_v22 }
 0x16d   : > { %1241 = vmatprep.subr.bf16.mxu0 %v1240_v30 }
 0x170   : > { %1243 = vmatpush1.bf16.msra.mxu0 %v1242_v34 }
 0x206   : > { %v536_v43 = vpop.f32.mrb[0].mxu0 }
 0x207   : > { %v537_v44 = vadd.f32 %v536_v43, %v452_v40  ;;  %v538_v45 = vpop.f32.mrb[1].mxu0 }
 0x208   : > { %v539_v46 = vadd.f32 %v538_v45, %v456_v42 }
 0x209   : > { %v541_v48 = vmax.f32 %v537_v44, 0.0 }
 0x20a   : > { %v542_v47 = vmax.f32 %v539_v46, 0.0 }
 0x20c   : > { %757 = vmatprep.mubr.f32.mxu1 %v542_v47  ;;  %828 = vmatprep.mubr.f32.mxu0 %v542_v47 }
 0x20d   : > { %758 = vmatmul.mubr.f32.vlgmr.msra.gmra.mrb[0].mxu1 %v541_v48  ;;  %829 = vmatmul.mubr.f32.vlgmr.msra.gmra.mrb[2].mxu0 %v541_v48 }
 0x2e0   : > { %v759_v59 = vpop.f32.mrb[0].mxu1  ;;  %v830_v60 = vpop.f32.mrb[2].mxu0 }
 0x2e1   : > { %v760_v61 = vadd.f32 %v759_v59, %v676_v54  ;;  %v831_v62 = vadd.f32 %v830_v60, %v684_v55  ;;  %v761_v63 = vpop.f32.mrb[1].mxu1  ;;  %v832_v0 = vpop.f32.mrb[3].mxu0 }
 0x2e2   : > { %v762_v1 = vadd.f32 %v761_v63, %v680_v56  ;;  %v833_v3 = vadd.f32 %v832_v0, %v688_v58 }
 0x2e4   : > { %v839_v4 = vcombine.low %v760_v61, %v762_v1  ;;  %v840_v41 = vcombine.low %v831_v62, %v833_v3 }
 0x2e6   : > { %v847_v5 = vrot.slane %v839_v4, %v846_v2  ;;  %v854_v6 = vrot.slane %v840_v41, %v846_v2 }
 0x2e8   : > { %v855_v7 = vcombine.low %v847_v5, %v854_v6 }
 0x2ea   : > { %857 = vst [vmem:[%s376_s4] sm:$0xff] %v855_v7 }
 0x2eb   : > { %1550 = shalt.err (!%p1547_p2)
}
 0x2ec   : > { %s1551_s28 = scalar_lea.hbm %s2326_s10, 128  ;;  %s1555_s14 = scalar_lea.hbm %s2465_s20, 1152 }
 0x2ed   : > { %p1552_p13 = scmp.ne.s32.totalorder %s2326_s10, %s1551_s28  ;;  %p1556_p3 = scmp.lt.u32.totalorder %s2326_s10, %s2465_s20 }
 0x2ee   : > { %p1557_p5 = scmp.lt.u32.totalorder %s1555_s14, %s1551_s28  ;;  %p1559_p8 = scmp.lt.u32.totalorder %s1551_s28, %s2326_s10 }
 0x2ef   : > { %p1553_p7 = pnand %p1552_p13, %p2466_p12 }
 0x2f0   : > { %p1558_p1 = por %p1557_p5, %p1556_p3 }
 0x2f1   : > { %p1554_p0 = pneg %p1553_p7 }
 0x2f2   : > { %p1560_p4 = por %p1559_p8, %p1558_p1 }
 0x2f4   : > { %p1561_p6 = pnand %p1560_p4, %p1554_p0 }
 0x2f6   : > { %1564 = shalt.err (!%p1561_p6)
}
 0x2f7   : > { %1260 = dma.vmem_to_hbm [thread:$0]  (%p2466_p12), %s2328_s26, 128, %s2326_s10, %s859_s30  }
 0x2f8 PF: > { %s2467_s3 = sld [smem:[#allocation28_spill]]  ;;  %p1290_p11 = scmp.ge.s32.totalorder %s1665_s15, 2 }
 0x2f9   : > { %s885_s24 = sand.u32 1, %s1629_s7  }
 0x2fa   : > { %s886_s1 = scalar_lea.sflag [#allocation6], %s885_s24 }
 0x2fe   : > { %p2468_p9 = scmp.ne.s32.totalorder %s2467_s3, 0 }
 0x300   : > { %p1284_p10 = pnand %p1290_p11, %p2468_p9 }
 0x302   : > { %1624 = dma.done.wait (!%p1284_p10), %s886_s1, 128  }
 0x303   : > { %1626 = vsyncadd (!%p1284_p10), %s886_s1, 4294967168  ;;  %s2469_s2 = sld [smem:[#allocation27_spill]]  ;;  %s2470_s12 = sld [smem:[#allocation24_spill]] }
 0x304   : > { %s2471_s0 = sld [smem:[#allocation29_spill]]  ;;  %s2472_s4 = sld [smem:[#allocation25_spill]] }
 0x305   : > { %s2473_s14 = sld [smem:[#allocation26_spill]]  ;;  %p27_p12 = scmp.ge.s32.totalorder %s1778_s16, 11  }
 0x306   : > { %s2474_s7 = smov %s1633_s8  ;;  %s2475_s8 = smov %s1637_s9 }
 0x307   : > { %s2477_s10 = smov %s1645_s11  ;;  %s2481_s15 = smov %s1778_s16 }
 0x308   :  { %29 = sbr.rel (!%p27_p12) target bundleno = 24 (0x18), region = 125 }
 0x309   : > { %s2476_s9 = smov %s2469_s2  ;;  %s2478_s11 = smov %s2470_s12 }
 0x30a   : > { %s2479_s12 = smov %s1657_s13  ;;  %s2480_s13 = smov %s2472_s4 }
 0x30f   :  { %891 = vsyncpa [#allocation5], 1 }
 0x310   :  { %893 = vsyncpa [#allocation5 + $0x1], 1 }
 0x311   :  { %894 = vsyncpa [#allocation8], 1 }
 0x312   :  { %896 = vsyncpa [#allocation8 + $0x1], 1 }
 0x313   :  { %897 = vsyncpa [#allocation11], 1 }
 0x314   :  { %899 = vsyncpa [#allocation11 + $0x1], 1 }
 0x315   :  { %900 = vsyncpa [#allocation6], 1 }
 0x316   :  { %902 = vsyncpa [#allocation6 + $0x1], 1 }

</bundles_post_ra>
